<compile_context>
chip_gen: v7x
topology: tpu7x:2x2x1
jax: 0.10.0
libtpu: 0.0.40
codegen_flags: <defaults>
</compile_context>

<pallas_src>
import jax
import jax.numpy as jnp
import numpy as np
from jax.experimental import pallas as pl
from jax.experimental.pallas import tpu as pltpu

_LANES = 128


def _bert_classifier_kernel(vlen_ref, emb_ref, wp_ref, bp_ref, wc_ref, bc_ref,
                            logits_ref, acc_ref):
    """Grid = (batch_tiles, seq_tiles); seq is the (last, 'arbitrary') reduction axis."""
    s = pl.program_id(1)
    ns = pl.num_programs(1)
    Bt, St, H = emb_ref.shape

    @pl.when(s == 0)
    def _init():
        acc_ref[...] = jnp.zeros_like(acc_ref)

    vlen = vlen_ref[...]                                          # [Bt, 1] i32

    # gen_attention_mask for this sequence tile: 1 where global pos < valid_len.
    pos = s * St + jax.lax.broadcasted_iota(jnp.int32, (Bt, St), 1)
    mask = (pos < vlen).astype(jnp.float32)                       # [Bt, St]

    # Synthetic BERT encoder stand-in: masked sum (mean taken at finalize).
    emb = emb_ref[...].astype(jnp.float32)                        # bf16 -> f32
    acc_ref[...] += jnp.sum(emb * mask[:, :, None], axis=1)       # [Bt, H]

    @pl.when(s == ns - 1)
    def _finalize():
        denom = jnp.maximum(vlen.astype(jnp.float32), 1.0)        # [Bt, 1]
        pooled = acc_ref[...] / denom                             # masked mean
        # BERT pooler: tanh(dense(pooled))
        pooler = jnp.tanh(
            jnp.dot(pooled, wp_ref[...], preferred_element_type=jnp.float32)
            + bp_ref[...])
        # dropout: eval-mode identity (see TODO above)
        # classifier (lane-dense, padded to 128 output columns)
        logits_ref[...] = (
            jnp.dot(pooler, wc_ref[...], preferred_element_type=jnp.float32)
            + bc_ref[...])


def _pick_seq_tile(bt, s_len, hidden, *, bytes_per_el=2,
                   budget_bytes=8 * 1024 * 1024):
    """Largest multiple-of-16 seq tile whose bf16 block fits the per-buffer budget."""
    per_pos = bt * hidden * bytes_per_el
    st = max(16, (budget_bytes // max(per_pos, 1)) // 16 * 16)
    s_ceil = -(-s_len // 16) * 16
    return int(min(st, s_ceil))


def bert_classifier_forward(token_ids, valid_length, segment_ids, params,
                            *, bt=None, st=None):
    """Pallas-backed forward of BERTClassifier (inference)."""
    B, S = token_ids.shape
    H = params["word_emb"].shape[1]
    C = params["wc"].shape[1]

    # Glue: embedding gather stays in plain JAX; stream the activations as bf16.
    emb = (params["word_emb"][token_ids]
           + params["seg_emb"][segment_ids]
           + params["pos_emb"][None, :S, :]).astype(jnp.bfloat16)   # [B, S, H]

    vlen = jnp.clip(valid_length.astype(jnp.int32), 0, S).reshape(B, 1)

    # Tile sizes.
    if bt is None:
        bt = 8 if B % 8 == 0 else B          # batch tile (sublane-aligned or full B)
    if st is None:
        st = _pick_seq_tile(bt, S, H)        # seq tile (multiple of 16, VMEM-bounded)

    # Pad S up to a multiple of st (padded positions are masked by pos < vlen).
    S_pad = -(-S // st) * st
    if S_pad != S:
        emb = jnp.pad(emb, ((0, 0), (0, S_pad - S), (0, 0)))

    # Lane-dense classifier: pad the output dimension to 128 columns.
    Cp = -(-C // _LANES) * _LANES
    wc_p = jnp.zeros((H, Cp), jnp.float32).at[:, :C].set(params["wc"])
    bc_p = jnp.zeros((1, Cp), jnp.float32).at[:, :C].set(params["bc"])

    nb = B // bt
    ns = S_pad // st

    logits_padded = pl.pallas_call(
        _bert_classifier_kernel,
        out_shape=jax.ShapeDtypeStruct((B, Cp), jnp.float32),
        grid=(nb, ns),
        in_specs=[
            pl.BlockSpec((bt, 1), lambda b, s: (b, 0)),           # valid_length
            pl.BlockSpec((bt, st, H), lambda b, s: (b, s, 0)),    # bf16 hidden states
            pl.BlockSpec((H, H), lambda b, s: (0, 0)),            # pooler weight (resident)
            pl.BlockSpec((1, H), lambda b, s: (0, 0)),            # pooler bias
            pl.BlockSpec((H, Cp), lambda b, s: (0, 0)),           # classifier weight (padded)
            pl.BlockSpec((1, Cp), lambda b, s: (0, 0)),           # classifier bias (padded)
        ],
        out_specs=pl.BlockSpec((bt, Cp), lambda b, s: (b, 0)),
        scratch_shapes=[pltpu.VMEM((bt, H), jnp.float32)],        # masked-sum accumulator
        compiler_params=pltpu.CompilerParams(
            dimension_semantics=("parallel", "arbitrary"),
            vmem_limit_bytes=32 * 1024 * 1024),
    )(vlen, emb, params["wp"], params["bp"], wc_p, bc_p)

    return logits_padded[:, :C]


def _reference_forward(token_ids, valid_length, segment_ids, params):
    """Pure-JAX f32 reference of the same synthetic forward (for sanity checking)."""
    B, S = token_ids.shape
    emb = (params["word_emb"][token_ids]
           + params["seg_emb"][segment_ids]
           + params["pos_emb"][None, :S, :]).astype(jnp.float32)
    vlen = jnp.clip(valid_length.astype(jnp.int32), 0, S)
    pos = jnp.arange(S, dtype=jnp.int32)[None, :]
    mask = (pos < vlen[:, None]).astype(jnp.float32)
    denom = jnp.maximum(vlen.astype(jnp.float32), 1.0)[:, None]
    pooled = jnp.sum(emb * mask[:, :, None], axis=1) / denom
    pooler = jnp.tanh(pooled @ params["wp"] + params["bp"])
    return pooler @ params["wc"] + params["bc"]


def init_params(key, vocab_size, seq_len, hidden_size, num_classes):
    ks = jax.random.split(key, 6)
    scale = 0.02
    return {
        "word_emb": scale * jax.random.normal(ks[0], (vocab_size, hidden_size), jnp.float32),
        "seg_emb":  scale * jax.random.normal(ks[1], (2, hidden_size), jnp.float32),
        "pos_emb":  scale * jax.random.normal(ks[2], (seq_len, hidden_size), jnp.float32),
        "wp": scale * jax.random.normal(ks[3], (hidden_size, hidden_size), jnp.float32),
        "bp": jnp.zeros((1, hidden_size), jnp.float32),
        "wc": scale * jax.random.normal(ks[4], (hidden_size, num_classes), jnp.float32),
        "bc": jnp.zeros((1, num_classes), jnp.float32),
    }


if __name__ == "__main__":
    B, S, H, C = 8, 60, 128, 2
    VOCAB = 100

    key = jax.random.PRNGKey(0)
    k_tok, k_seg, k_par = jax.random.split(key, 3)

    token_ids = jax.random.randint(k_tok, (B, S), 0, VOCAB, dtype=jnp.int32)
    segment_ids = jax.random.randint(k_seg, (B, S), 0, 2, dtype=jnp.int32)
    valid_length = jnp.array([5, 60, 17, 33, 1, 8, 47, 60], dtype=jnp.int32)

    params = init_params(k_par, VOCAB, S, H, C)

    # st=16 -> 4 sequence-reduction grid steps (exercises the pipelined accumulator
    # and the padded last tile: S=60 is padded to 64 inside the wrapper).
    logits = bert_classifier_forward(token_ids, valid_length, segment_ids,
                                     params, st=16)
    jax.block_until_ready(logits)
    assert logits.shape == (B, C) and logits.dtype == jnp.float32

    ref = _reference_forward(token_ids, valid_length, segment_ids, params)
    np.testing.assert_allclose(np.asarray(logits), np.asarray(ref),
                               rtol=5e-2, atol=5e-4)
    print("KERNEL_OK")
</pallas_src>

<mosaic_0001>
module attributes {stable_mosaic.version = 11 : i64} {
  func.func @_bert_classifier_kernel(%arg0: i32, %arg1: i32, %arg2: memref<8x1xi32, #tpu.memory_space<vmem>>, %arg3: memref<8x16x128xbf16, #tpu.memory_space<vmem>>, %arg4: memref<128x128xf32, #tpu.memory_space<vmem>>, %arg5: memref<1x128xf32, #tpu.memory_space<vmem>>, %arg6: memref<128x128xf32, #tpu.memory_space<vmem>>, %arg7: memref<1x128xf32, #tpu.memory_space<vmem>>, %arg8: memref<8x128xf32, #tpu.memory_space<vmem>>, %arg9: memref<8x128xf32, #tpu.memory_space<vmem>>) attributes {dimension_semantics = [#tpu.dimension_semantics<parallel>, #tpu.dimension_semantics<arbitrary>], iteration_bounds = array<i64: 1, 4>, scalar_prefetch = 0 : i64, scratch_operands = 1 : i64, tpu.core_type = #tpu.core_type<tc>, window_params = [{transform_indices = @transform_0, window_bounds = array<i64: 8, 1>}, {transform_indices = @transform_1, window_bounds = array<i64: 8, 16, 128>}, {pipeline_mode = #tpu.pipeline_mode<synchronous>, transform_indices = @transform_2, window_bounds = array<i64: 128, 128>}, {pipeline_mode = #tpu.pipeline_mode<synchronous>, transform_indices = @transform_3, window_bounds = array<i64: 1, 128>}, {pipeline_mode = #tpu.pipeline_mode<synchronous>, transform_indices = @transform_4, window_bounds = array<i64: 128, 128>}, {pipeline_mode = #tpu.pipeline_mode<synchronous>, transform_indices = @transform_5, window_bounds = array<i64: 1, 128>}, {transform_indices = @transform_6, window_bounds = array<i64: 8, 128>}]} {
    %c0_i32 = arith.constant 0 : i32
    %0 = arith.cmpi eq, %arg1, %c0_i32 : i32
    %1 = arith.extui %0 : i1 to i32
    %c0_i32_0 = arith.constant 0 : i32
    %2 = arith.cmpi ne, %1, %c0_i32_0 : i32
    scf.if %2 {
      %cst_10 = arith.constant 0.000000e+00 : f32
      %24 = vector.broadcast %cst_10 : f32 to vector<8x128xf32>
      %c0_11 = arith.constant 0 : index
      %c0_12 = arith.constant 0 : index
      %25 = vector.load %arg9[%c0_11, %c0_12] : memref<8x128xf32, #tpu.memory_space<vmem>>, vector<8x128xf32>
      tpu.vector_store %arg9[%c0_11, %c0_12], %24 {strides = array<i32>} : memref<8x128xf32, #tpu.memory_space<vmem>>, vector<8x128xf32>,
    } else {
    }
    %c0 = arith.constant 0 : index
    %c0_1 = arith.constant 0 : index
    %3 = vector.load %arg2[%c0, %c0_1] : memref<8x1xi32, #tpu.memory_space<vmem>>, vector<8x1xi32>
    %c16_i32 = arith.constant 16 : i32
    %4 = arith.muli %arg1, %c16_i32 : i32
    %5 = tpu.iota {dimensions = array<i32: 1>} : vector<8x16xi32>
    %6 = vector.broadcast %4 : i32 to vector<8x16xi32>
    %7 = arith.addi %6, %5 : vector<8x16xi32>
    %8 = vector.broadcast %3 : vector<8x1xi32> to vector<8x16xi32>
    %9 = arith.cmpi slt, %7, %8 : vector<8x16xi32>
    %10 = arith.extui %9 : vector<8x16xi1> to vector<8x16xi32>
    %11 = arith.sitofp %10 : vector<8x16xi32> to vector<8x16xf32>
    %c0_2 = arith.constant 0 : index
    %c0_3 = arith.constant 0 : index
    %c0_4 = arith.constant 0 : index
    %12 = vector.load %arg3[%c0_2, %c0_3, %c0_4] : memref<8x16x128xbf16, #tpu.memory_space<vmem>>, vector<8x16x128xbf16>
    %13 = arith.extf %12 : vector<8x16x128xbf16> to vector<8x16x128xf32>
    %c0_5 = arith.constant 0 : index
    %c0_6 = arith.constant 0 : index
    %14 = vector.load %arg9[%c0_5, %c0_6] : memref<8x128xf32, #tpu.memory_space<vmem>>, vector<8x128xf32>
    %15 = vector.shape_cast %11 : vector<8x16xf32> to vector<8x16x1xf32>
    %16 = vector.broadcast %15 : vector<8x16x1xf32> to vector<8x16x128xf32>
    %17 = arith.mulf %13, %16 : vector<8x16x128xf32>
    %cst = arith.constant dense<0.000000e+00> : vector<8x128xf32>
    %18 = vector.multi_reduction <add>, %17, %cst [1] : vector<8x16x128xf32> to vector<8x128xf32>
    %19 = arith.addf %14, %18 : vector<8x128xf32>
    %c0_7 = arith.constant 0 : index
    %c0_8 = arith.constant 0 : index
    %20 = vector.load %arg9[%c0_7, %c0_8] : memref<8x128xf32, #tpu.memory_space<vmem>>, vector<8x128xf32>
    tpu.vector_store %arg9[%c0_7, %c0_8], %19 {strides = array<i32>} : memref<8x128xf32, #tpu.memory_space<vmem>>, vector<8x128xf32>,
    %c3_i32 = arith.constant 3 : i32
    %21 = arith.cmpi eq, %arg1, %c3_i32 : i32
    %22 = arith.extui %21 : i1 to i32
    %c0_i32_9 = arith.constant 0 : i32
    %23 = arith.cmpi ne, %22, %c0_i32_9 : i32
    scf.if %23 {
      %24 = arith.sitofp %3 : vector<8x1xi32> to vector<8x1xf32>
      %cst_10 = arith.constant 1.000000e+00 : f32
      %25 = vector.broadcast %cst_10 : f32 to vector<8x1xf32>
      %26 = arith.maximumf %24, %25 : vector<8x1xf32>
      %c0_11 = arith.constant 0 : index
      %c0_12 = arith.constant 0 : index
      %27 = vector.load %arg9[%c0_11, %c0_12] : memref<8x128xf32, #tpu.memory_space<vmem>>, vector<8x128xf32>
      %28 = vector.broadcast %26 : vector<8x1xf32> to vector<8x128xf32>
      %29 = arith.divf %27, %28 : vector<8x128xf32>
      %c0_13 = arith.constant 0 : index
      %c0_14 = arith.constant 0 : index
      %30 = vector.load %arg4[%c0_13, %c0_14] : memref<128x128xf32, #tpu.memory_space<vmem>>, vector<128x128xf32>
      %cst_15 = arith.constant dense<0.000000e+00> : vector<8x128xf32>
      %31 = tpu.matmul %29, %30, %cst_15 {dimension_numbers = #tpu.dot_dimension_numbers<[1], [0], [0], [1], [0, 0, 1, 1], [], []>} : vector<8x128xf32>, vector<128x128xf32>, vector<8x128xf32> -> vector<8x128xf32>
      %c0_16 = arith.constant 0 : index
      %c0_17 = arith.constant 0 : index
      %32 = vector.load %arg5[%c0_16, %c0_17] : memref<1x128xf32, #tpu.memory_space<vmem>>, vector<1x128xf32>
      %33 = vector.broadcast %32 : vector<1x128xf32> to vector<8x128xf32>
      %34 = arith.addf %31, %33 : vector<8x128xf32>
      %35 = math.tanh %34 : vector<8x128xf32>
      %c0_18 = arith.constant 0 : index
      %c0_19 = arith.constant 0 : index
      %36 = vector.load %arg6[%c0_18, %c0_19] : memref<128x128xf32, #tpu.memory_space<vmem>>, vector<128x128xf32>
      %cst_20 = arith.constant dense<0.000000e+00> : vector<8x128xf32>
      %37 = tpu.matmul %35, %36, %cst_20 {dimension_numbers = #tpu.dot_dimension_numbers<[1], [0], [0], [1], [0, 0, 1, 1], [], []>} : vector<8x128xf32>, vector<128x128xf32>, vector<8x128xf32> -> vector<8x128xf32>
      %c0_21 = arith.constant 0 : index
      %c0_22 = arith.constant 0 : index
      %38 = vector.load %arg7[%c0_21, %c0_22] : memref<1x128xf32, #tpu.memory_space<vmem>>, vector<1x128xf32>
      %39 = vector.broadcast %38 : vector<1x128xf32> to vector<8x128xf32>
      %40 = arith.addf %37, %39 : vector<8x128xf32>
      %c0_23 = arith.constant 0 : index
      %c0_24 = arith.constant 0 : index
      %41 = vector.load %arg8[%c0_23, %c0_24] : memref<8x128xf32, #tpu.memory_space<vmem>>, vector<8x128xf32>
      tpu.vector_store %arg8[%c0_23, %c0_24], %40 {strides = array<i32>} : memref<8x128xf32, #tpu.memory_space<vmem>>, vector<8x128xf32>,
    } else {
    }
    return
  }
  func.func @transform_0(%arg0: i32, %arg1: i32) -> (i32, i32) {
    %c0_i32 = arith.constant 0 : i32
    %c0_i32_0 = arith.constant 0 : i32
    return %arg0, %c0_i32 : i32, i32
  }
  func.func @transform_1(%arg0: i32, %arg1: i32) -> (i32, i32, i32) {
    %c0_i32 = arith.constant 0 : i32
    %c0_i32_0 = arith.constant 0 : i32
    return %arg0, %arg1, %c0_i32 : i32, i32, i32
  }
  func.func @transform_2(%arg0: i32, %arg1: i32) -> (i32, i32) {
    %c0_i32 = arith.constant 0 : i32
    %c0_i32_0 = arith.constant 0 : i32
    %c0_i32_1 = arith.constant 0 : i32
    return %c0_i32, %c0_i32_0 : i32, i32
  }
  func.func @transform_3(%arg0: i32, %arg1: i32) -> (i32, i32) {
    %c0_i32 = arith.constant 0 : i32
    %c0_i32_0 = arith.constant 0 : i32
    %c0_i32_1 = arith.constant 0 : i32
    return %c0_i32, %c0_i32_0 : i32, i32
  }
  func.func @transform_4(%arg0: i32, %arg1: i32) -> (i32, i32) {
    %c0_i32 = arith.constant 0 : i32
    %c0_i32_0 = arith.constant 0 : i32
    %c0_i32_1 = arith.constant 0 : i32
    return %c0_i32, %c0_i32_0 : i32, i32
  }
  func.func @transform_5(%arg0: i32, %arg1: i32) -> (i32, i32) {
    %c0_i32 = arith.constant 0 : i32
    %c0_i32_0 = arith.constant 0 : i32
    %c0_i32_1 = arith.constant 0 : i32
    return %c0_i32, %c0_i32_0 : i32, i32
  }
  func.func @transform_6(%arg0: i32, %arg1: i32) -> (i32, i32) {
    %c0_i32 = arith.constant 0 : i32
    %c0_i32_0 = arith.constant 0 : i32
    return %arg0, %c0_i32 : i32, i32
  }
}

</mosaic_0001>

<bundles_post_ra>
// kernel: tpu_custom_call.1
= control target key start
LH: loop header
LB: loop body
LE: loop exit
PB: predicated region body
PF: predicated region fallthrough
CT: control target
= control target key end

     0   :  { %11 = vsyncpa [#allocation4], 0  ;;  %s1657_s0 = inlined_call_operand.vmem [shape: s32[8,1], index: 0, kind: input, shape index: {}]   ;;  %s1658_s1 = inlined_call_operand.hbm [shape: bf16[8,64,128], index: 1, kind: input, shape index: {}]   ;;  %s1659_s2 = inlined_call_operand.hbm [shape: f32[128,128], index: 2, kind: input, shape index: {}]   ;;  %s1660_s3 = inlined_call_operand.vmem [shape: f32[1,128], index: 3, kind: input, shape index: {}]   ;;  %s1661_s4 = inlined_call_operand.hbm [shape: f32[128,128], index: 4, kind: input, shape index: {}]   ;;  %s1662_s5 = inlined_call_operand.vmem [shape: f32[1,128], index: 5, kind: input, shape index: {}]   ;;  %s1663_s6 = inlined_call_operand.hbm [shape: f32[8,128], index: 6, kind: output, shape index: {}]  }
   0x1   :  { %13 = vsyncpa [#allocation4 + $0x1], 0 }
   0x2   :  { %14 = vsyncpa [#allocation7], 0 }
   0x3   :  { %15 = vsyncpa [#allocation5], 0  ;;  %s1415_s21 = smov 0   ;;  %s1417_s22 = smov 0  }
   0x4   :  { %s1419_s23 = smov 0   ;;  %s1421_s24 = smov 0  }
   0x5   :  { %s1423_s25 = smov 0   ;;  %s1425_s26 = smov 0  }
   0x6 LB: > { %s1669_s27 = sadd.s32 4294967295, %s1360_s26   ;;  %s30_s28 = sadd.s32 1, %s1356_s25  ;;  %s1360_s26 = sphi %s1425_s26, %s21_s26   ;;  %s1356_s25 = sphi %s1423_s25, %s1688_s25   ;;  %s1352_s24 = sphi %s1421_s24, %s1687_s24   ;;  %s1348_s23 = sphi %s1419_s23, %s1686_s23   ;;  %s1344_s22 = sphi %s1417_s22, %s1685_s22   ;;  %s1340_s21 = sphi %s1415_s21, %s1684_s21  }
   0x7   : > { %p31_p0 = scmp.ge.s32.totalorder %s30_s28, 4  ;;  %s68_s29 = sadd.s32 1, %s1348_s23 }
   0x8   : > { %p75_p1 = scmp.ne.s32.totalorder %s1348_s23, %s1344_s22  ;;  %p76_p2 = scmp.eq.s32.totalorder %s1360_s26, 0 }
   0x9   : > { %s1690_s28 = smov (%p31_p0, %s30_s28), 0  ;;  %p81_p4 = scmp.ne.s32.totalorder %s1344_s22, %s1340_s21 }
   0xa   : > { %1671 = sst [smem:[#allocation16_spill]] %s1690_s28  ;;  %p1451_p3 = por %p76_p2, %p75_p1 }
   0xb   : > { %s64_s7 = ssub.s32 %s1356_s25, %s1690_s28  ;;  %p1460_p5 = scmp.eq.s32.totalorder %s1669_s27, 0 }
   0xc   : > { %s1672_s30 = scalar_select %p1451_p3, 1, 0 }
   0xd   : > { %s1673_s8 = scalar_select %p1460_p5, 1, 0 }
   0xe   : > { %p66_p6 = scmp.eq.s32.totalorder %s64_s7, 0  ;;  %p898_p7 = scmp.ge.s32.totalorder %s1360_s26, 1 }
   0xf   : > { %p1467_p8 = por %p1460_p5, %p81_p4  ;;  %p202_p9 = scmp.lt.s32.totalorder %s1360_s26, 5 }
  0x10   : > { %s1473_s10 = scalar_select %p66_p6, %s1348_s23, %s68_s29  }
  0x11   : > { %s1674_s9 = scalar_select %p1467_p8, 1, 0 }
  0x12   : > { %p1475_p10 = pnand %p898_p7, %p202_p9  ;;  %s1362_s12 = smov [#allocation6]  }
  0x13   : > { %s221_s13 = sshll.u32 %s1362_s12, 4  ;;  %s1363_s15 = smov [#allocation8]   ;;  %s222_s13 = int_to_ptr.vmem [resolvable:$true] %s221_s13 }
  0x14   : > { %s1675_s11 = scalar_select %p1475_p10, 1, 0 }
  0x15   : > { %p1135_p11 = pneg %p1475_p10  ;;  %s237_s16 = sshll.u32 %s1363_s15, 4  ;;  %s1487_s16 = int_to_ptr.vmem [resolvable:$true] %s237_s16 }
  0x16   : > { %s1220_s19 = scalar_lea.hbm %s1659_s2, 2048 }
  0x17   : > { %p1483_p12 = pnand %p1135_p11, %p1460_p5  ;;  %p1221_p13 = scmp.ne.s32.totalorder %s1659_s2, %s1220_s19 }
  0x18   : > { %p1227_p4 = scmp.lt.u32.totalorder %s1220_s19, %s1659_s2 }
  0x19   : > { %p1222_p0 = pneg %p1483_p12 }
  0x1b   : > { %p1223_p1 = pnand %p1222_p0, %p1221_p13 }
  0x1d   : > { %p1224_p2 = pneg %p1223_p1 }
  0x1f   : > { %p1229_p6 = pnand %p1227_p4, %p1224_p2 }
  0x21   : > { %1232 = shalt.err (!%p1229_p6)
}
  0x22   : > { %s1233_s12 = scalar_lea.vmem %s222_s13, 2048  ;;  %p1241_p5 = scmp.lt.s32.totalorder %s222_s13, %s222_s13 }
  0x23   : > { %p1234_p7 = scmp.ne.s32.totalorder %s222_s13, %s1233_s12  ;;  %p1242_p8 = scmp.lt.s32.totalorder %s1233_s12, %s1233_s12 }
  0x25   : > { %p1236_p9 = pnand %p1234_p7, %p1222_p0  ;;  %p1243_p10 = por %p1242_p8, %p1241_p5 }
  0x27   : > { %p1237_p11 = pneg %p1236_p9 }
  0x29   : > { %p1244_p3 = pnand %p1243_p10, %p1237_p11 }
  0x2b   : > { %1247 = shalt.err (!%p1244_p3)
}
  0x2c   : > { %s1364_s15 = smov 128   ;;  %s1365_s17 = smov 8  }
  0x2d   : > { %1138 = dma.hbm_to_vmem [thread:$0]  (!%p1483_p12), %s1659_s2, 2048, %s222_s13, [#allocation7], %s1364_s15, %s1364_s15, %s1365_s17  }
  0x2e   : > { %s1248_s29 = scalar_lea.hbm %s1661_s4, 2048 }
  0x2f   : > { %p1249_p13 = scmp.ne.s32.totalorder %s1661_s4, %s1248_s29  ;;  %p1255_p8 = scmp.lt.u32.totalorder %s1248_s29, %s1661_s4 }
  0x31   : > { %p1251_p3 = pnand %p1249_p13, %p1222_p0 }
  0x33   : > { %p1252_p5 = pneg %p1251_p3 }
  0x35   : > { %p1257_p10 = pnand %p1255_p8, %p1252_p5 }
  0x37   : > { %1260 = shalt.err (!%p1257_p10)
}
  0x38   : > { %s1261_s13 = scalar_lea.vmem %s1487_s16, 2048  ;;  %p1269_p6 = scmp.lt.s32.totalorder %s1487_s16, %s1487_s16 }
  0x39   : > { %p1262_p1 = scmp.ne.s32.totalorder %s1487_s16, %s1261_s13  ;;  %p1270_p7 = scmp.lt.s32.totalorder %s1261_s13, %s1261_s13 }
  0x3b   : > { %p1264_p2 = pnand %p1262_p1, %p1222_p0  ;;  %p1271_p9 = por %p1270_p7, %p1269_p6 }
  0x3d   : > { %p1265_p4 = pneg %p1264_p2 }
  0x3f   : > { %p1272_p11 = pnand %p1271_p9, %p1265_p4 }
  0x41   : > { %1275 = shalt.err (!%p1272_p11)
}
  0x42   : > { %1141 = dma.hbm_to_vmem [thread:$0]  (!%p1483_p12), %s1661_s4, 2048, %s1487_s16, [#allocation7], %s1364_s15, %s1364_s15, %s1365_s17  }
  0x43   : > { %p902_p13 = scmp.ge.s32.totalorder %s1360_s26, 4 }
  0x45   : > { %250 = sbr.rel (%p902_p13) target bundleno = 91 (0x5b), region = 36 }
  0x4c   : > { %s254_s18 = sand.u32 1, %s1348_s23   ;;  %s922_s19 = sshll.u32 %s1356_s25, 7 }
  0x4d   : > { %s903_s20 = sshll.u32 %s254_s18, 6  ;;  %s267_s29 = scalar_lea.hbm %s1658_s1, %s922_s19 }
  0x4e   : > { %p1677_p0 = scmp.ne.s32.totalorder %s1672_s30, 0  ;;  %s258_s15 = scalar_lea.vmem [#allocation3], %s903_s20 }
  0x4f   : > { %s280_s17 = sshll.u32 %s258_s15, 4  ;;  %s1366_s12 = smov 512   ;;  %s281_s17 = int_to_ptr.vmem [resolvable:$true] %s280_s17 }
  0x50   : > { %s1118_s16 = scalar_select %p1677_p0, [#allocation0], [#allocation12] }
  0x51   : > { %1119 = sst [smem:[#allocation11]] (%p1677_p0), %s1366_s12  ;;  %s1367_s13 = smov 128  }
  0x52   : > { %s272_s7 = sld [smem:[%s1118_s16]]   ;;  %s1368_s27 = smov 2  }
  0x53   : > { %1120 = sst [smem:[#allocation11 + $0x1]] (%p1677_p0), %s1367_s13  ;;  %s1369_s28 = smov 64  }
  0x54   : > { %1121 = sst [smem:[#allocation11 + $0x2]] (%p1677_p0), %s1368_s27  ;;  %s1370_s20 = smov 4  }
  0x55   : > { %1122 = sst [smem:[#allocation11 + $0x3]] (%p1677_p0), %s1369_s28  ;;  %s255_s21 = scalar_lea.sflag [#allocation4], %s254_s18 }
  0x56   : > { %1123 = sst [smem:[#allocation11 + $0x4]] (%p1677_p0), %s1369_s28  ;;  %s1371_s16 = smov [#allocation10]  }
  0x57   : > { %1124 = sst [smem:[#allocation11 + $0x5]] (%p1677_p0), %s1370_s20 }
  0x58   : > { %s906_s19 = sshll.u32 %s272_s7, 26 }
  0x59   : > { %s907_s14 = sadd.s32 134217728, %s906_s19 }
  0x5a   : > { %1125 = dma.general (%p1677_p0), %s267_s29, 1024, %s281_s17, %s255_s21, %s1371_s16, [#allocation11], %s907_s14, 0  }
  0x5b PF: > { %p1678_p12 = scmp.ne.s32.totalorder %s1675_s11, 0 }
  0x5c   : > { %s307_s15 = sand.u32 (!%p1678_p12), 1, %s1344_s22   ;;  %p1679_p3 = scmp.ne.s32.totalorder (!%p1678_p12), %s1674_s9, 0 }
  0x5d   : > { %305 = sbr.rel (%p1678_p12) target bundleno = 995 (0x3e3), region = 44  ;;  %s909_s12 = sshll.u32 (!%p1678_p12), %s307_s15, 6 }
  0x5e   : > { %s308_s13 = scalar_lea.sflag (!%p1678_p12), [#allocation4], %s307_s15  ;;  %s1561_s27 = scalar_lea.vmem (!%p1678_p12), [#allocation3], %s909_s12 }
  0x64   : > { %1327 = dma.done.wait (%p1679_p3), %s308_s13, 1024  }
  0x65   : > { %1329 = vsyncadd (%p1679_p3), %s308_s13, 4294966272  ;;  %p1680_p5 = scmp.ne.s32.totalorder %s1673_s8, 0 }
  0x67   : > { %1331 = dma.done.wait (%p1680_p5), [#allocation7], 4096  }
  0x68   : > { %1333 = vsyncadd (%p1680_p5), [#allocation7], 4294963200  ;;  %p912_p8 = scmp.ne.s32.totalorder %s1352_s24, 0 }
  0x69   : > { %v1372_v0 = vmov (!%p912_p8), 0.0  }
  0x6a   : > { %356 = sbr.rel (%p912_p8) target bundleno = 113 (0x71), region = 60  ;;  %357 = vst [vmem:[#allocation2] sm:$0xff] (!%p912_p8), %v1372_v0 }
  0x71 PF: > { %v1575_v1 = vld [vmem:[%s1657_s0] sm:$0xff]  ;;  %v1373_v2 = vmov 0   ;;  %v360_v3 = vlaneseq  ;;  %s913_s9 = sshll.u32 %s1352_s24, 4  ;;  %v1374_v10 = vmov 0.0   ;;  %v955_v29 = vld [vmem:[%s1561_s27 + $0x8] sm:$0xff]   ;;  %v924_v30 = vld [vmem:[%s1561_s27] sm:$0xff]  }
  0x72   : > { %1214 = vset.pattern.permute.xlu0 %v1373_v2  ;;  %v362_v5 = vstv %s913_s9  ;;  %v956_v31 = vld [vmem:[%s1561_s27 + $0x10] sm:$0xff]   ;;  %v929_v32 = vunpack.c.l.bf16 %v955_v29  ;;  %v930_v33 = vunpack.c.h.bf16 %v955_v29  ;;  %v926_v34 = vunpack.c.h.bf16 %v924_v30  ;;  %v957_v40 = vld [vmem:[%s1561_s27 + $0x18] sm:$0xff]   ;;  %v958_v51 = vld [vmem:[%s1561_s27 + $0x20] sm:$0xff]   ;;  %p915_p10 = scmp.ne.s32.totalorder %s1352_s24, 3 }
  0x73   : > { %365 = vperm.xlu0 %1214, %v1575_v1   ;;  %v361_v4 = vand.u32 127, %v360_v3  ;;  %v404_v6 = vshrl.u32 %v360_v3, 7  ;;  %v925_v35 = vunpack.c.l.bf16 %v924_v30  ;;  %v933_v38 = vunpack.c.l.bf16 %v956_v31  ;;  %v959_v61 = vld [vmem:[%s1561_s27 + $0x28] sm:$0xff]  }
  0x74   : > { %v934_v39 = vunpack.c.h.bf16 %v956_v31  ;;  %v937_v49 = vunpack.c.l.bf16 %v957_v40  ;;  %v938_v50 = vunpack.c.h.bf16 %v957_v40  ;;  %v941_v58 = vunpack.c.l.bf16 %v958_v51 }
  0x75   : > { %v363_v7 = vadd.s32 %v362_v5, %v361_v4  ;;  %v405_v8 = vsub.s32 0, %v404_v6  ;;  %v416_v13 = vsub.s32 1, %v404_v6  ;;  %v427_v15 = vsub.s32 2, %v404_v6 }
  0x76   : > { %v438_v17 = vsub.s32 3, %v404_v6  ;;  %v449_v19 = vsub.s32 4, %v404_v6  ;;  %v460_v21 = vsub.s32 5, %v404_v6  ;;  %v471_v23 = vsub.s32 6, %v404_v6 }
  0x77   : > { %v482_v25 = vsub.s32 7, %v404_v6  ;;  %v942_v59 = vunpack.c.h.bf16 %v958_v51  ;;  %vm571_vm1 = vcmask 1041409   ;;  %vm573_vm2 = vcmask 1042434  }
  0x78   : > { %vm575_vm3 = vcmask 1043459   ;;  %vm577_vm4 = vcmask 1044484   ;;  %vm579_vm5 = vcmask 1045509   ;;  %vm581_vm6 = vcmask 1046534  }
  0x79   : > { %vm583_vm7 = vcmask 1047559   ;;  %vm1377_vm8 = vmmov (!%p915_p10), 0  }
  0xf2   : > { %v366_v9 = vpop.permute.xlu0 %365 }
  0xf3   : > { %vm367_vm0 = vcmp.lt.s32.totalorder %v363_v7, %v366_v9  ;;  %v945_v7 = vunpack.c.l.bf16 %v959_v61 }
  0xf4   : > { %v914_v11 = vsel %vm367_vm0, 1.0, %v1374_v10  ;;  %v946_v10 = vunpack.c.h.bf16 %v959_v61 }
  0xf5   : > { %v406_v12 = vrot.slane %v914_v11, %v405_v8  ;;  %v417_v14 = vrot.slane %v914_v11, %v416_v13  ;;  %v428_v16 = vrot.slane %v914_v11, %v427_v15  ;;  %v439_v18 = vrot.slane %v914_v11, %v438_v17  ;;  %v960_v8 = vld [vmem:[%s1561_s27 + $0x30] sm:$0xff]  }
  0xf6   : > { %v450_v20 = vrot.slane %v914_v11, %v449_v19  ;;  %v461_v22 = vrot.slane %v914_v11, %v460_v21  ;;  %v472_v24 = vrot.slane %v914_v11, %v471_v23  ;;  %v483_v26 = vrot.slane %v914_v11, %v482_v25 }
  0xf7   : > { %412 = vbcast.lane.b32.xlu1 %v406_v12, 264  ;;  %408 = vbcast.lane.b32.xlu0 %v406_v12, 256  ;;  %v949_v17 = vunpack.c.l.bf16 %v960_v8  ;;  %v950_v21 = vunpack.c.h.bf16 %v960_v8 }
  0xfb   : > { %419 = vbcast.lane.b32.xlu1 %v417_v14, 256  ;;  %423 = vbcast.lane.b32.xlu0 %v417_v14, 264 }
  0xff   : > { %430 = vbcast.lane.b32.xlu1 %v428_v16, 256  ;;  %434 = vbcast.lane.b32.xlu0 %v428_v16, 264 }
 0x103   : > { %441 = vbcast.lane.b32.xlu1 %v439_v18, 256  ;;  %445 = vbcast.lane.b32.xlu0 %v439_v18, 264 }
 0x107   : > { %452 = vbcast.lane.b32.xlu1 %v450_v20, 256  ;;  %456 = vbcast.lane.b32.xlu0 %v450_v20, 264 }
 0x10b   : > { %463 = vbcast.lane.b32.xlu1 %v461_v22, 256  ;;  %467 = vbcast.lane.b32.xlu0 %v461_v22, 264  ;;  %v961_v22 = vld [vmem:[%s1561_s27 + $0x38] sm:$0xff]  }
 0x10c   : > { %v953_v31 = vunpack.c.l.bf16 %v961_v22 }
 0x10f   : > { %474 = vbcast.lane.b32.xlu1 %v472_v24, 256  ;;  %478 = vbcast.lane.b32.xlu0 %v472_v24, 264 }
 0x113   : > { %485 = vbcast.lane.b32.xlu1 %v483_v26, 256  ;;  %489 = vbcast.lane.b32.xlu0 %v483_v26, 264 }
 0x169   : > { %v413_v27 = vpop.permute.xlu1 %412  ;;  %v409_v28 = vpop.permute.xlu0 %408 }
 0x16a   : > { %v492_v43 = vmul.f32 %v926_v34, %v413_v27  ;;  %v491_v44 = vmul.f32 %v925_v35, %v409_v28  ;;  %v954_v35 = vunpack.c.h.bf16 %v961_v22  ;;  %v592_v22 = vcvt.s32.f32 (!%p915_p10), %v1575_v1  ;;  %v607_v1 = vld [vmem:[#allocation6 + $0x28] sm:$0xff] (!%p915_p10) }
 0x16c   : > { %v507_v53 = vadd.f32 %v492_v43, %v491_v44 }
 0x16d   : > { %v420_v36 = vpop.permute.xlu1 %419  ;;  %v424_v37 = vpop.permute.xlu0 %423 }
 0x16e   : > { %v493_v41 = vmul.f32 %v929_v32, %v420_v36  ;;  %v494_v42 = vmul.f32 %v930_v33, %v424_v37  ;;  %v508_v63 = vrot.slane %v507_v53, 4 }
 0x170   : > { %v514_v52 = vadd.f32 %v494_v42, %v493_v41  ;;  %v509_v13 = vadd.f32 %v508_v63, %v507_v53 }
 0x171   : > { %v431_v45 = vpop.permute.xlu1 %430  ;;  %v435_v46 = vpop.permute.xlu0 %434 }
 0x172   : > { %v495_v47 = vmul.f32 %v933_v38, %v431_v45  ;;  %v496_v48 = vmul.f32 %v934_v39, %v435_v46  ;;  %v515_v62 = vrot.slane %v514_v52, 4  ;;  %v510_v26 = vrot.slane %v509_v13, 2 }
 0x174   : > { %v521_v54 = vadd.f32 %v496_v48, %v495_v47  ;;  %v516_v11 = vadd.f32 %v515_v62, %v514_v52  ;;  %v511_v40 = vadd.f32 %v510_v26, %v509_v13  ;;  %v1375_v26 = vmov (!%p915_p10), 0  }
 0x175   : > { %v442_v55 = vpop.permute.xlu1 %441  ;;  %v446_v56 = vpop.permute.xlu0 %445  ;;  %1215 = vset.pattern.permute.xlu0 (!%p915_p10), %v1375_v26 }
 0x176   : > { %v497_v57 = vmul.f32 %v937_v49, %v442_v55  ;;  %v498_v60 = vmul.f32 %v938_v50, %v446_v56  ;;  %v522_v0 = vrot.slane %v521_v54, 4  ;;  %v517_v24 = vrot.slane %v516_v11, 2 }
 0x177   : > { %v512_v56 = vrot.slane %v511_v40, 1 }
 0x178   : > { %v528_v2 = vadd.f32 %v498_v60, %v497_v57  ;;  %v523_v14 = vadd.f32 %v522_v0, %v521_v54  ;;  %v518_v38 = vadd.f32 %v517_v24, %v516_v11  ;;  %v603_v24 = vld [vmem:[#allocation6 + $0x8] sm:$0xff] (!%p915_p10) }
 0x179   : > { %v453_v3 = vpop.permute.xlu1 %452  ;;  %v457_v4 = vpop.permute.xlu0 %456 }
 0x17a   : > { %v499_v5 = vmul.f32 %v941_v58, %v453_v3  ;;  %v500_v6 = vmul.f32 %v942_v59, %v457_v4  ;;  %v529_v9 = vrot.slane %v528_v2, 4  ;;  %v524_v27 = vrot.slane %v523_v14, 2 }
 0x17b   : > { %v519_v51 = vrot.slane %v518_v38, 1  ;;  %v513_v3 = vadd.f32 %v512_v56, %v511_v40  ;;  %v617_v56 = vld [vmem:[#allocation6 + $0x78] sm:$0xff] (!%p915_p10) }
 0x17c   : > { %v535_v12 = vadd.f32 %v500_v6, %v499_v5  ;;  %v530_v18 = vadd.f32 %v529_v9, %v528_v2  ;;  %v525_v41 = vadd.f32 %v524_v27, %v523_v14  ;;  %v1376_v27 = vmov (!%p915_p10), 0.0|0.0  }
 0x17d   : > { %v464_v15 = vpop.permute.xlu1 %463  ;;  %v468_v16 = vpop.permute.xlu0 %467  ;;  %v520_v61 = vadd.f32 %v519_v51, %v518_v38  ;;  %1066 = vmatprep.subr.bf16.mxu0 (!%p915_p10), %v1376_v27  ;;  %1090 = vmatprep.subr.bf16.mxu1 (!%p915_p10), %v1376_v27  ;;  %v610_v38 = vld [vmem:[#allocation6 + $0x40] sm:$0xff] (!%p915_p10) }
 0x17e   : > { %v536_v19 = vrot.slane %v535_v12, 4  ;;  %v501_v20 = vmul.f32 %v945_v7, %v464_v15  ;;  %v502_v23 = vmul.f32 %v946_v10, %v468_v16  ;;  %v531_v32 = vrot.slane %v530_v18, 2 }
 0x17f   : > { %v526_v54 = vrot.slane %v525_v41, 1  ;;  %v572_v8 = vsel %vm571_vm1, %v520_v61, %v513_v3 }
 0x180   : > { %v537_v25 = vadd.f32 %v536_v19, %v535_v12  ;;  %v542_v28 = vadd.f32 %v502_v23, %v501_v20  ;;  %v532_v45 = vadd.f32 %v531_v32, %v530_v18  ;;  %v602_v23 = vld [vmem:[#allocation6] sm:$0xff] (!%p915_p10) }
 0x181   : > { %v475_v29 = vpop.permute.xlu1 %474  ;;  %v479_v30 = vpop.permute.xlu0 %478  ;;  %v527_v2 = vadd.f32 %v526_v54, %v525_v41  ;;  %v606_v32 = vld [vmem:[#allocation6 + $0x20] sm:$0xff] (!%p915_p10)  ;;  %v612_v41 = vld [vmem:[#allocation6 + $0x50] sm:$0xff] (!%p915_p10) }
 0x182   : > { %v503_v33 = vmul.f32 %v949_v17, %v475_v29  ;;  %v504_v34 = vmul.f32 %v950_v21, %v479_v30  ;;  %v538_v36 = vrot.slane %v537_v25, 2  ;;  %v543_v37 = vrot.slane %v542_v28, 4  ;;  %v402_v17 = vld [vmem:[#allocation2] sm:$0xff] }
 0x183   : > { %v533_v57 = vrot.slane %v532_v45, 1  ;;  %v574_v11 = vsel %vm573_vm2, %v527_v2, %v572_v8  ;;  %v605_v29 = vld [vmem:[#allocation6 + $0x18] sm:$0xff] (!%p915_p10)  ;;  %v593_v30 = vmax.f32 (!%p915_p10), %v592_v22, 1.0 }
 0x184   : > { %v549_v39 = vadd.f32 %v504_v34, %v503_v33  ;;  %v544_v42 = vadd.f32 %v543_v37, %v542_v28  ;;  %v539_v49 = vadd.f32 %v538_v36, %v537_v25  ;;  %v604_v25 = vld [vmem:[#allocation6 + $0x10] sm:$0xff] (!%p915_p10)  ;;  %v1067_v28 = vpack.c.bf16 (!%p915_p10), %v603_v24, %v602_v23  ;;  %v609_v36 = vld [vmem:[#allocation6 + $0x38] sm:$0xff] (!%p915_p10) }
 0x185   : > { %v486_v43 = vpop.permute.xlu1 %485  ;;  %v490_v44 = vpop.permute.xlu0 %489  ;;  %v534_v4 = vadd.f32 %v533_v57, %v532_v45  ;;  %597 = vperm.xlu0 (!%p915_p10), %1215, %v593_v30   ;;  %v1378_v33 = vmov (!%p915_p10), 0.0   ;;  %v1073_v34 = vpack.c.bf16 (!%p915_p10), %v607_v1, %v606_v32  ;;  %v698_v45 = vld [vmem:[#allocation8 + $0x10] sm:$0xff] (!%p915_p10) }
 0x186   : > { %v550_v46 = vrot.slane %v549_v39, 4  ;;  %v505_v47 = vmul.f32 %v953_v31, %v486_v43  ;;  %v506_v48 = vmul.f32 %v954_v35, %v490_v44  ;;  %v545_v50 = vrot.slane %v544_v42, 2  ;;  %1068 = vmatpush3.bf16.msra.mxu0 (!%p915_p10), %v1067_v28  ;;  %1028 = vmatprep.mubr.msk.f32.mxu0 (!%p915_p10), %vm1377_vm8, %v1378_v33  ;;  %v608_v35 = vld [vmem:[#allocation6 + $0x30] sm:$0xff] (!%p915_p10)  ;;  %v696_v43 = vld [vmem:[#allocation8] sm:$0xff] (!%p915_p10)  ;;  %v697_v44 = vld [vmem:[#allocation8 + $0x8] sm:$0xff] (!%p915_p10) }
 0x187   : > { %v540_v60 = vrot.slane %v539_v49, 1  ;;  %v576_v13 = vsel %vm575_vm3, %v534_v4, %v574_v11  ;;  %v1070_v31 = vpack.c.bf16 (!%p915_p10), %v605_v29, %v604_v25  ;;  %1069 = vmatprep.subr.bf16.mxu0 (!%p915_p10), %v1376_v27  ;;  %1063 = vmatprep.mubr.msk.f32.mxu1 (!%p915_p10), %vm1377_vm8, %v1378_v33  ;;  %v1076_v37 = vpack.c.bf16 (!%p915_p10), %v609_v36, %v608_v35 }
 0x188   : > { %v551_v52 = vadd.f32 %v550_v46, %v549_v39  ;;  %v556_v53 = vadd.f32 %v506_v48, %v505_v47  ;;  %v546_v55 = vadd.f32 %v545_v50, %v544_v42  ;;  %v611_v39 = vld [vmem:[#allocation6 + $0x48] sm:$0xff] (!%p915_p10)  ;;  %v613_v42 = vld [vmem:[#allocation6 + $0x58] sm:$0xff] (!%p915_p10)  ;;  %v1091_v46 = vpack.c.bf16 (!%p915_p10), %v697_v44, %v696_v43 }
 0x189   : > { %v541_v7 = vadd.f32 %v540_v60, %v539_v49  ;;  %v1079_v40 = vpack.c.bf16 (!%p915_p10), %v611_v39, %v610_v38  ;;  %v699_v47 = vld [vmem:[#allocation8 + $0x18] sm:$0xff] (!%p915_p10)  ;;  %v1082_v48 = vpack.c.bf16 (!%p915_p10), %v613_v42, %v612_v41  ;;  %v614_v49 = vld [vmem:[#allocation6 + $0x60] sm:$0xff] (!%p915_p10)  ;;  %v615_v50 = vld [vmem:[#allocation6 + $0x68] sm:$0xff] (!%p915_p10) }
 0x18a   : > { %v552_v58 = vrot.slane %v551_v52, 2  ;;  %v557_v59 = vrot.slane %v556_v53, 4  ;;  %v547_v62 = vrot.slane %v546_v55, 1  ;;  %1071 = vmatpush3.bf16.msra.mxu0 (!%p915_p10), %v1070_v31  ;;  %1092 = vmatpush3.bf16.msra.mxu1 (!%p915_p10), %v1091_v46  ;;  %v1094_v51 = vpack.c.bf16 (!%p915_p10), %v699_v47, %v698_v45 }
 0x18b   : > { %v578_v15 = vsel %vm577_vm4, %v541_v7, %v576_v13  ;;  %1072 = vmatprep.subr.bf16.mxu0 (!%p915_p10), %v1376_v27  ;;  %1093 = vmatprep.subr.bf16.mxu1 (!%p915_p10), %v1376_v27  ;;  %v1085_v54 = vpack.c.bf16 (!%p915_p10), %v615_v50, %v614_v49  ;;  %v707_v7 = vld [vmem:[#allocation8 + $0x58] sm:$0xff] (!%p915_p10) }
 0x18c   : > { %v553_v63 = vadd.f32 %v552_v58, %v551_v52  ;;  %v558_v0 = vadd.f32 %v557_v59, %v556_v53  ;;  %v548_v9 = vadd.f32 %v547_v62, %v546_v55  ;;  %v700_v52 = vld [vmem:[#allocation8 + $0x20] sm:$0xff] (!%p915_p10)  ;;  %v701_v53 = vld [vmem:[#allocation8 + $0x28] sm:$0xff] (!%p915_p10)  ;;  %v616_v55 = vld [vmem:[#allocation6 + $0x70] sm:$0xff] (!%p915_p10) }
 0x18d   : > { %v1097_v57 = vpack.c.bf16 (!%p915_p10), %v701_v53, %v700_v52  ;;  %v702_v58 = vld [vmem:[#allocation8 + $0x30] sm:$0xff] (!%p915_p10)  ;;  %v703_v59 = vld [vmem:[#allocation8 + $0x38] sm:$0xff] (!%p915_p10)  ;;  %v1088_v60 = vpack.c.bf16 (!%p915_p10), %v617_v56, %v616_v55  ;;  %v704_v62 = vld [vmem:[#allocation8 + $0x40] sm:$0xff] (!%p915_p10) }
 0x18e   : > { %v554_v5 = vrot.slane %v553_v63, 1  ;;  %v559_v6 = vrot.slane %v558_v0, 2  ;;  %v580_v16 = vsel %vm579_vm5, %v548_v9, %v578_v15  ;;  %1074 = vmatpush3.bf16.msra.mxu0 (!%p915_p10), %v1073_v34  ;;  %1095 = vmatpush3.bf16.msra.mxu1 (!%p915_p10), %v1094_v51  ;;  %v1100_v61 = vpack.c.bf16 (!%p915_p10), %v703_v59, %v702_v58  ;;  %v708_v9 = vld [vmem:[#allocation8 + $0x60] sm:$0xff] (!%p915_p10)  ;;  %v711_v13 = vld [vmem:[#allocation8 + $0x78] sm:$0xff] (!%p915_p10) }
 0x18f   : > { %1075 = vmatprep.subr.bf16.mxu0 (!%p915_p10), %v1376_v27  ;;  %1096 = vmatprep.subr.bf16.mxu1 (!%p915_p10), %v1376_v27  ;;  %v916_v15 = vld [vmem:[%s1660_s3] ss:$0 sm:$0xff] (!%p915_p10) }
 0x190   : > { %v560_v10 = vadd.f32 %v559_v6, %v558_v0  ;;  %v555_v12 = vadd.f32 %v554_v5, %v553_v63  ;;  %v705_v63 = vld [vmem:[#allocation8 + $0x48] sm:$0xff] (!%p915_p10)  ;;  %v706_v6 = vld [vmem:[#allocation8 + $0x50] sm:$0xff] (!%p915_p10) }
 0x191   : > { %v1103_v0 = vpack.c.bf16 (!%p915_p10), %v705_v63, %v704_v62  ;;  %v1106_v8 = vpack.c.bf16 (!%p915_p10), %v707_v7, %v706_v6 }
 0x192   : > { %v561_v14 = vrot.slane %v560_v10, 1  ;;  %v582_v19 = vsel %vm581_vm6, %v555_v12, %v580_v16  ;;  %1077 = vmatpush3.bf16.msra.mxu0 (!%p915_p10), %v1076_v37  ;;  %1098 = vmatpush3.bf16.msra.mxu1 (!%p915_p10), %v1097_v57  ;;  %v710_v12 = vld [vmem:[#allocation8 + $0x70] sm:$0xff] (!%p915_p10) }
 0x193   : > { %591 = sbr.rel (%p915_p10) target bundleno = 970 (0x3ca), region = 64  ;;  %1078 = vmatprep.subr.bf16.mxu0 (!%p915_p10), %v1376_v27  ;;  %1099 = vmatprep.subr.bf16.mxu1 (!%p915_p10), %v1376_v27 }
 0x194   : > { %v562_v18 = vadd.f32 %v561_v14, %v560_v10  ;;  %v709_v10 = vld [vmem:[#allocation8 + $0x68] sm:$0xff] (!%p915_p10)  ;;  %v1112_v14 = vpack.c.bf16 (!%p915_p10), %v711_v13, %v710_v12 }
 0x195   : > { %v1109_v11 = vpack.c.bf16 (!%p915_p10), %v709_v10, %v708_v9 }
 0x196   : > { %v584_v20 = vsel %vm583_vm7, %v562_v18, %v582_v19  ;;  %1080 = vmatpush3.bf16.msra.mxu0 (!%p915_p10), %v1079_v40  ;;  %1101 = vmatpush3.bf16.msra.mxu1 (!%p915_p10), %v1100_v61 }
 0x197   : > { %v586_v21 = vadd.f32 %v584_v20, %v402_v17  ;;  %1081 = vmatprep.subr.bf16.mxu0 (!%p915_p10), %v1376_v27  ;;  %1102 = vmatprep.subr.bf16.mxu1 (!%p915_p10), %v1376_v27  ;;  %v917_v20 = vld [vmem:[%s1662_s5] ss:$0 sm:$0xff] (!%p915_p10) }
 0x199   : > { %587 = vst [vmem:[#allocation2] sm:$0xff] %v586_v21 }
 0x19a   : > { %1083 = vmatpush3.bf16.msra.mxu0 %v1082_v48  ;;  %1104 = vmatpush3.bf16.msra.mxu1 %v1103_v0 }
 0x19b   : > { %1084 = vmatprep.subr.bf16.mxu0 %v1376_v27  ;;  %1105 = vmatprep.subr.bf16.mxu1 %v1376_v27 }
 0x19e   : > { %1086 = vmatpush3.bf16.msra.mxu0 %v1085_v54  ;;  %1107 = vmatpush3.bf16.msra.mxu1 %v1106_v8 }
 0x19f   : > { %1087 = vmatprep.subr.bf16.mxu0 %v1376_v27  ;;  %1108 = vmatprep.subr.bf16.mxu1 %v1376_v27 }
 0x1a0   : > { %v594_v3 = vld [vmem:[#allocation2] sm:$0xff] }
 0x1a2   : > { %1089 = vmatpush3.bf16.msra.mxu0 %v1088_v60  ;;  %1110 = vmatpush3.bf16.msra.mxu1 %v1109_v11 }
 0x1a3   : > { %1111 = vmatprep.subr.bf16.mxu1 %v1376_v27 }
 0x1a6   : > { %1113 = vmatpush3.bf16.msra.mxu1 %v1112_v14 }
 0x204   : > { %v598_v2 = vpop.permute.xlu0 %597 }
 0x205   : > { %1216 = vrcp.f32 %v598_v2 }
 0x20f   : > { %v1217_v4 = vpop.eup %1216 }
 0x210   : > { %v601_v5 = vmul.f32 %v1217_v4, %v594_v3 }
 0x212   : > { %1029 = vmatmul.mubr.f32.vlgmr.msra.gmra.mrb[0].mxu0 %v601_v5 }
 0x2e5   : > { %v691_v16 = vpop.f32.mrb[0].mxu0 }
 0x2e6   : > { %v692_v17 = vadd.f32 %v916_v15, %v691_v16  ;;  %v1030_v18 = vpop.f32.mrb[1].mxu0 }
 0x2e8   : > { %1218 = vtanh.f32 %v692_v17 }
 0x2f2   : > { %v1219_v19 = vpop.eup %1218 }
 0x2f3   : > { %1064 = vmatmul.mubr.f32.vlgmr.msra.gmra.mrb[0].mxu1 %v1219_v19 }
 0x3c6   : > { %v785_v21 = vpop.f32.mrb[0].mxu1 }
 0x3c7   : > { %v786_v22 = vadd.f32 %v917_v20, %v785_v21  ;;  %v1065_v23 = vpop.f32.mrb[1].mxu1 }
 0x3c9   : > { %789 = vst [vmem:[#allocation9] sm:$0xff] %v786_v22 }
 0x3ca PF: > { %s1681_s17 = sadd.s32 4294967295, %s1360_s26   ;;  %s1379_s28 = smov [#allocation9]  }
 0x3cb   : > { %p1613_p1 = scmp.eq.s32.totalorder %s1681_s17, 3  ;;  %s799_s19 = sshll.u32 %s1379_s28, 4  ;;  %s800_s19 = int_to_ptr.vmem [resolvable:$true] %s799_s19 }
 0x3cc   : > { %s1276_s20 = scalar_lea.vmem %s800_s19, 128  ;;  %p1283_p7 = scmp.lt.s32.totalorder %s800_s19, %s800_s19 }
 0x3cd   : > { %p1277_p2 = scmp.ne.s32.totalorder %s800_s19, %s1276_s20  ;;  %p1284_p9 = scmp.lt.s32.totalorder %s1276_s20, %s1276_s20 }
 0x3cf   : > { %p1278_p4 = pnand %p1277_p2, %p1613_p1  ;;  %p1285_p11 = por %p1284_p9, %p1283_p7 }
 0x3d1   : > { %p1279_p6 = pneg %p1278_p4 }
 0x3d3   : > { %p1286_p13 = pnand %p1285_p11, %p1279_p6 }
 0x3d5   : > { %1289 = shalt.err (!%p1286_p13)
}
 0x3d6   : > { %s1290_s16 = scalar_lea.hbm %s1663_s6, 128 }
 0x3d7   : > { %p1291_p0 = scmp.ne.s32.totalorder %s1663_s6, %s1290_s16  ;;  %p1296_p5 = scmp.lt.u32.totalorder %s1290_s16, %s1663_s6 }
 0x3d9   : > { %p1292_p12 = pnand %p1291_p0, %p1613_p1 }
 0x3db   : > { %p1293_p3 = pneg %p1292_p12 }
 0x3dd   : > { %p1298_p8 = pnand %p1296_p5, %p1293_p3 }
 0x3df   : > { %1301 = shalt.err (!%p1298_p8)
}
 0x3e0   : > { %1132 = dma.vmem_to_hbm [thread:$0]  (%p1613_p1), %s800_s19, 128, %s1663_s6, [#allocation5]  }
 0x3e1   : > { %1335 = dma.done.wait (%p1613_p1), [#allocation5], 128  }
 0x3e2   : > { %1337 = vsyncadd (%p1613_p1), [#allocation5], 4294967168 }
 0x3e3 PF: > { %s21_s26 = sadd.s32 1, %s1360_s26   ;;  %s1683_s9 = sld [smem:[#allocation16_spill]] }
 0x3e4   : > { %p18_p10 = scmp.ge.s32.totalorder %s21_s26, 6   ;;  %s1684_s21 = smov %s1344_s22 }
 0x3e5   : > { %s1685_s22 = smov %s1348_s23  ;;  %s1686_s23 = smov %s1473_s10 }
 0x3e6   : > { %s1687_s24 = smov %s1356_s25  ;;  %20 = sbr.rel (!%p18_p10) target bundleno = 6 (0x6), region = 106 }
 0x3e9   : > { %s1688_s25 = smov %s1683_s9 }
 0x3ed   :  { %812 = vsyncpa [#allocation4], 1 }
 0x3ee   :  { %814 = vsyncpa [#allocation4 + $0x1], 1 }
 0x3ef   :  { %815 = vsyncpa [#allocation7], 1 }
 0x3f0   :  { %816 = vsyncpa [#allocation5], 1 }
 0x3f1   :  { %818 = vsyncpa [#allocation5 + $0x1], 1 }

</bundles_post_ra>
